<compile_context>
chip_gen: v6e
topology: v6e:2x2x1
jax: 0.10.0
libtpu: 0.0.40
codegen_flags: <defaults>
</compile_context>

<pallas_src>
import jax
import jax.numpy as jnp
from jax.experimental import pallas as pl
from jax.experimental.pallas import tpu as pltpu

IN_FEATURES = 26
HIDDEN = 17          # layer_one/two/three/four/general_layer_node = 17
N_GENERAL = 8        # hidden_layer1..hidden_layer8
OUT_FEATURES = 1

MAX_TILE_B = 4096            # batch tile (lanes), multiple of 256
_STEP_OVERHEAD_LANES = 384   # ~600-cycle per-grid-step overhead in "lane equivalents"


def _round_up(n, m):
    return ((n + m - 1) // m) * m


def _default_epilogue_dtype():
    """bf16 epilogue only on chips with a bf16 VPU path (v6e / v7x)."""
    try:
        kind = jax.devices()[0].device_kind.lower()
    except Exception:
        return jnp.float32
    if ("v6" in kind) or ("v7" in kind) or ("7x" in kind):
        return jnp.bfloat16
    return jnp.float32


def _choose_tile(batch, max_tile_b=MAX_TILE_B):
    """Pick (tile_b, padded_batch).

    Prefers >= 2 grid steps (both v7x TensorCores get work), then minimizes an
    estimated cost = grid_steps * (per-step overhead + lanes per step), which
    penalizes both tiny tiles (overhead-bound) and heavy zero-padding.
    """
    padded128 = _round_up(max(batch, 1), 128)
    if padded128 <= 128:
        return 128, 128
    candidates = [128] + list(range(256, max_tile_b + 1, 256))
    best_key, best = None, None
    for t in candidates:
        padded = _round_up(padded128, t)
        grid = padded // t
        cost = grid * (_STEP_OVERHEAD_LANES + t)
        key = (0 if grid >= 2 else 1, cost, -t)
        if best_key is None or key < best_key:
            best_key, best = key, (t, padded)
    return best


def _make_kernel(tile_b, n_split, compute_dtype):
    """Build the MLP kernel for a given tile size / chain split / epilogue dtype."""
    assert tile_b % n_split == 0
    half = tile_b // n_split

    def kernel(x_ref, w_in_ref, b_in_ref, w_hid_ref, b_hid_ref,
               w_out_ref, b_out_ref, o_ref):
        # x_ref:     (IN_FEATURES, tile_b)          bf16  (batch on lanes)
        # w_in_ref:  (HIDDEN, IN_FEATURES)          bf16
        # b_in_ref:  (HIDDEN, 1)                    compute_dtype
        # w_hid_ref: (N_GENERAL, HIDDEN, HIDDEN)    bf16
        # b_hid_ref: (N_GENERAL, HIDDEN, 1)         compute_dtype
        # w_out_ref: (HIDDEN, OUT_FEATURES)         f32   (output-layer column)
        # b_out_ref: (OUT_FEATURES, 1)              f32
        # o_ref:     (OUT_FEATURES, tile_b)         f32   (lane-dense)
        slices = [pl.ds(c * half, half) for c in range(n_split)]

        # Input layer + ReLU on each independent lane-half chain.
        accs = [jnp.dot(w_in_ref[...], x_ref[:, sl],
                        preferred_element_type=jnp.float32) for sl in slices]
        hs = [jnp.maximum(a.astype(compute_dtype) + b_in_ref[...], 0)
              for a in accs]

        # hidden_layer1..hidden_layer8, fully unrolled; the n_split chains are
        # interleaved per layer so one chain's MXU pushes hide the other
        # chain's drain + bias/ReLU epilogue.
        for i in range(N_GENERAL):
            accs = [jnp.dot(w_hid_ref[i], h.astype(jnp.bfloat16),
                            preferred_element_type=jnp.float32) for h in hs]
            hs = [jnp.maximum(a.astype(compute_dtype) + b_hid_ref[i], 0)
                  for a in accs]

        # Output layer (1-wide): VPU broadcast-multiply + sublane reduction
        # instead of an MXU matmul, then sigmoid.  Lane-dense store.
        for sl, h in zip(slices, hs):
            logits = jnp.sum(h.astype(jnp.float32) * w_out_ref[...],
                             axis=0, keepdims=True)
            o_ref[:, sl] = jax.nn.sigmoid(logits + b_out_ref[...])

    return kernel


def net_forward(x, params, *, max_tile_b=MAX_TILE_B, epilogue_dtype=None):
    """x: (batch, 26) float32; returns (batch, 1) float32."""
    (w_in, b_in, w_hid, b_hid, w_out, b_out) = params
    batch = x.shape[0]
    if epilogue_dtype is None:
        epilogue_dtype = _default_epilogue_dtype()

    tile_b, padded = _choose_tile(batch, max_tile_b)
    grid_b = padded // tile_b
    n_split = 2 if (tile_b % 256 == 0) else 1

    # Fused pad + cast + transpose -> (26, padded) bf16 (no zeros+update-slice).
    x_t = jnp.pad(x.astype(jnp.bfloat16), ((0, padded - batch), (0, 0))).T

    # Pre-transpose weights so each layer is W^T @ h; biases become columns.
    # NOTE: params use the (in, out) convention of init_params below; real
    # torch nn.Linear checkpoints store (out, in) and would need the opposite
    # transposes.
    w_in_t = w_in.T.astype(jnp.bfloat16)                              # (17, 26)
    w_hid_t = jnp.transpose(w_hid, (0, 2, 1)).astype(jnp.bfloat16)    # (8, 17, 17)
    b_in_c = b_in.reshape(HIDDEN, 1).astype(epilogue_dtype)
    b_hid_c = b_hid.reshape(N_GENERAL, HIDDEN, 1).astype(epilogue_dtype)
    w_out_c = w_out.reshape(HIDDEN, OUT_FEATURES).astype(jnp.float32)  # (17, 1)
    b_out_c = b_out.reshape(OUT_FEATURES, 1).astype(jnp.float32)       # (1, 1)

    flops = 2 * padded * (IN_FEATURES * HIDDEN
                          + N_GENERAL * HIDDEN * HIDDEN
                          + HIDDEN * OUT_FEATURES)
    bytes_accessed = (x_t.size * 2 + padded * OUT_FEATURES * 4
                      + (w_in_t.size + w_hid_t.size) * 2
                      + (b_in_c.size + b_hid_c.size) * b_in_c.dtype.itemsize
                      + (w_out_c.size + b_out_c.size) * 4)

    kernel = _make_kernel(tile_b, n_split, epilogue_dtype)

    out_t = pl.pallas_call(
        kernel,
        out_shape=jax.ShapeDtypeStruct((OUT_FEATURES, padded), jnp.float32),
        grid=(grid_b,),
        in_specs=[
            pl.BlockSpec((IN_FEATURES, tile_b), lambda i: (0, i)),          # x tile
            pl.BlockSpec((HIDDEN, IN_FEATURES), lambda i: (0, 0)),          # w_in (resident)
            pl.BlockSpec((HIDDEN, 1), lambda i: (0, 0)),                    # b_in
            pl.BlockSpec((N_GENERAL, HIDDEN, HIDDEN), lambda i: (0, 0, 0)),  # w_hid
            pl.BlockSpec((N_GENERAL, HIDDEN, 1), lambda i: (0, 0, 0)),      # b_hid
            pl.BlockSpec((HIDDEN, OUT_FEATURES), lambda i: (0, 0)),         # w_out column
            pl.BlockSpec((OUT_FEATURES, 1), lambda i: (0, 0)),              # b_out
        ],
        out_specs=pl.BlockSpec((OUT_FEATURES, tile_b), lambda i: (0, i)),
        compiler_params=pltpu.CompilerParams(
            dimension_semantics=("parallel",),   # shard batch across v7x's 2 TCs
            vmem_limit_bytes=8 * 1024 * 1024,    # modest: actual need ~2 MiB at 4096 lanes
        ),
        cost_estimate=pl.CostEstimate(
            flops=flops, transcendentals=padded, bytes_accessed=bytes_accessed),
    )(x_t, w_in_t, b_in_c, w_hid_t, b_hid_c, w_out_c, b_out_c)

    # Back to (batch, 1), drop batch padding.
    return out_t[:, :batch].T


def init_params(key):
    """Deterministic synthetic parameter init (uniform, torch-Linear-like bound)."""
    ks = jax.random.split(key, 6)

    def u(k, shape, fan_in):
        bound = 1.0 / jnp.sqrt(float(fan_in))
        return jax.random.uniform(k, shape, jnp.float32, -bound, bound)

    w_in = u(ks[0], (IN_FEATURES, HIDDEN), IN_FEATURES)          # (26, 17)
    b_in = u(ks[1], (1, HIDDEN), IN_FEATURES)                    # (1, 17)
    w_hid = u(ks[2], (N_GENERAL, HIDDEN, HIDDEN), HIDDEN)        # (8, 17, 17)
    b_hid = u(ks[3], (N_GENERAL, 1, HIDDEN), HIDDEN)             # (8, 1, 17)
    w_out = u(ks[4], (HIDDEN, OUT_FEATURES), HIDDEN)             # (17, 1)
    b_out = u(ks[5], (1, OUT_FEATURES), HIDDEN)                  # (1, 1)
    return (w_in, b_in, w_hid, b_hid, w_out, b_out)


def net_forward_ref(x, params):
    """Pure-JAX f32 reference for validation (matches the PyTorch forward)."""
    (w_in, b_in, w_hid, b_hid, w_out, b_out) = params
    h = jnp.maximum(x @ w_in + b_in, 0.0)
    for i in range(N_GENERAL):
        h = jnp.maximum(h @ w_hid[i] + b_hid[i], 0.0)
    return jax.nn.sigmoid(h @ w_out + b_out)


if __name__ == "__main__":
    key = jax.random.PRNGKey(0)
    k_x, k_x2, k_p = jax.random.split(key, 3)
    params = init_params(k_p)

    # Small batch: exercises the 128-lane single-chain path (grid=1).
    batch = 8
    x = jax.random.normal(k_x, (batch, IN_FEATURES), jnp.float32)
    out = jax.block_until_ready(net_forward(x, params))
    ref = net_forward_ref(x, params)
    assert out.shape == (batch, OUT_FEATURES)
    assert jnp.allclose(out, ref, atol=3e-2, rtol=3e-2), "mismatch vs reference (small)"

    # Ragged batch: exercises adaptive tiling, grid>=2 and the 2-chain split.
    batch2 = 300
    x2 = jax.random.normal(k_x2, (batch2, IN_FEATURES), jnp.float32)
    out2 = jax.block_until_ready(net_forward(x2, params))
    ref2 = net_forward_ref(x2, params)
    assert out2.shape == (batch2, OUT_FEATURES)
    assert jnp.allclose(out2, ref2, atol=3e-2, rtol=3e-2), "mismatch vs reference (ragged)"

    print("KERNEL_OK")
</pallas_src>

<mosaic_0001>
module attributes {stable_mosaic.version = 11 : i64} {
  func.func @kernel(%arg0: i32, %arg1: memref<26x128xbf16, #tpu.memory_space<vmem>>, %arg2: memref<17x26xbf16, #tpu.memory_space<vmem>>, %arg3: memref<17x1xf32, #tpu.memory_space<vmem>>, %arg4: memref<8x17x17xbf16, #tpu.memory_space<vmem>>, %arg5: memref<8x17x1xf32, #tpu.memory_space<vmem>>, %arg6: memref<17x1xf32, #tpu.memory_space<vmem>>, %arg7: memref<1x1xf32, #tpu.memory_space<vmem>>, %arg8: memref<1x128xf32, #tpu.memory_space<vmem>>) attributes {dimension_semantics = [#tpu.dimension_semantics<parallel>], iteration_bounds = array<i64: 1>, scalar_prefetch = 0 : i64, scratch_operands = 0 : i64, tpu.core_type = #tpu.core_type<tc>, window_params = [{transform_indices = @transform_0, window_bounds = array<i64: 26, 128>}, {pipeline_mode = #tpu.pipeline_mode<synchronous>, transform_indices = @transform_1, window_bounds = array<i64: 17, 26>}, {pipeline_mode = #tpu.pipeline_mode<synchronous>, transform_indices = @transform_2, window_bounds = array<i64: 17, 1>}, {pipeline_mode = #tpu.pipeline_mode<synchronous>, transform_indices = @transform_3, window_bounds = array<i64: 8, 17, 17>}, {pipeline_mode = #tpu.pipeline_mode<synchronous>, transform_indices = @transform_4, window_bounds = array<i64: 8, 17, 1>}, {pipeline_mode = #tpu.pipeline_mode<synchronous>, transform_indices = @transform_5, window_bounds = array<i64: 17, 1>}, {pipeline_mode = #tpu.pipeline_mode<synchronous>, transform_indices = @transform_6, window_bounds = array<i64: 1, 1>}, {transform_indices = @transform_7, window_bounds = array<i64: 1, 128>}]} {
    %c0 = arith.constant 0 : index
    %c0_0 = arith.constant 0 : index
    %0 = vector.load %arg2[%c0, %c0_0] : memref<17x26xbf16, #tpu.memory_space<vmem>>, vector<17x26xbf16>
    %c0_1 = arith.constant 0 : index
    %c0_2 = arith.constant 0 : index
    %1 = vector.load %arg1[%c0_1, %c0_2] : memref<26x128xbf16, #tpu.memory_space<vmem>>, vector<26x128xbf16>
    %cst = arith.constant dense<0.000000e+00> : vector<17x128xf32>
    %2 = tpu.matmul %0, %1, %cst {dimension_numbers = #tpu.dot_dimension_numbers<[1], [0], [0], [1], [0, 0, 1, 1], [], []>} : vector<17x26xbf16>, vector<26x128xbf16>, vector<17x128xf32> -> vector<17x128xf32>
    %c0_3 = arith.constant 0 : index
    %c0_4 = arith.constant 0 : index
    %3 = vector.load %arg3[%c0_3, %c0_4] : memref<17x1xf32, #tpu.memory_space<vmem>>, vector<17x1xf32>
    %4 = vector.broadcast %3 : vector<17x1xf32> to vector<17x128xf32>
    %5 = arith.addf %2, %4 : vector<17x128xf32>
    %cst_5 = arith.constant 0.000000e+00 : f32
    %6 = vector.broadcast %cst_5 : f32 to vector<17x128xf32>
    %7 = arith.maximumf %5, %6 : vector<17x128xf32>
    %c0_6 = arith.constant 0 : index
    %c0_7 = arith.constant 0 : index
    %c0_8 = arith.constant 0 : index
    %8 = vector.load %arg4[%c0_6, %c0_7, %c0_8] : memref<8x17x17xbf16, #tpu.memory_space<vmem>>, vector<1x17x17xbf16>
    %9 = vector.shape_cast %8 : vector<1x17x17xbf16> to vector<17x17xbf16>
    %10 = arith.truncf %7 : vector<17x128xf32> to vector<17x128xbf16>
    %cst_9 = arith.constant dense<0.000000e+00> : vector<17x128xf32>
    %11 = tpu.matmul %9, %10, %cst_9 {dimension_numbers = #tpu.dot_dimension_numbers<[1], [0], [0], [1], [0, 0, 1, 1], [], []>} : vector<17x17xbf16>, vector<17x128xbf16>, vector<17x128xf32> -> vector<17x128xf32>
    %c0_10 = arith.constant 0 : index
    %c0_11 = arith.constant 0 : index
    %c0_12 = arith.constant 0 : index
    %12 = vector.load %arg5[%c0_10, %c0_11, %c0_12] : memref<8x17x1xf32, #tpu.memory_space<vmem>>, vector<1x17x1xf32>
    %13 = vector.shape_cast %12 : vector<1x17x1xf32> to vector<17x1xf32>
    %14 = vector.broadcast %13 : vector<17x1xf32> to vector<17x128xf32>
    %15 = arith.addf %11, %14 : vector<17x128xf32>
    %cst_13 = arith.constant 0.000000e+00 : f32
    %16 = vector.broadcast %cst_13 : f32 to vector<17x128xf32>
    %17 = arith.maximumf %15, %16 : vector<17x128xf32>
    %c1 = arith.constant 1 : index
    %c0_14 = arith.constant 0 : index
    %c0_15 = arith.constant 0 : index
    %18 = vector.load %arg4[%c1, %c0_14, %c0_15] : memref<8x17x17xbf16, #tpu.memory_space<vmem>>, vector<1x17x17xbf16>
    %19 = vector.shape_cast %18 : vector<1x17x17xbf16> to vector<17x17xbf16>
    %20 = arith.truncf %17 : vector<17x128xf32> to vector<17x128xbf16>
    %cst_16 = arith.constant dense<0.000000e+00> : vector<17x128xf32>
    %21 = tpu.matmul %19, %20, %cst_16 {dimension_numbers = #tpu.dot_dimension_numbers<[1], [0], [0], [1], [0, 0, 1, 1], [], []>} : vector<17x17xbf16>, vector<17x128xbf16>, vector<17x128xf32> -> vector<17x128xf32>
    %c1_17 = arith.constant 1 : index
    %c0_18 = arith.constant 0 : index
    %c0_19 = arith.constant 0 : index
    %22 = vector.load %arg5[%c1_17, %c0_18, %c0_19] : memref<8x17x1xf32, #tpu.memory_space<vmem>>, vector<1x17x1xf32>
    %23 = vector.shape_cast %22 : vector<1x17x1xf32> to vector<17x1xf32>
    %24 = vector.broadcast %23 : vector<17x1xf32> to vector<17x128xf32>
    %25 = arith.addf %21, %24 : vector<17x128xf32>
    %cst_20 = arith.constant 0.000000e+00 : f32
    %26 = vector.broadcast %cst_20 : f32 to vector<17x128xf32>
    %27 = arith.maximumf %25, %26 : vector<17x128xf32>
    %c2 = arith.constant 2 : index
    %c0_21 = arith.constant 0 : index
    %c0_22 = arith.constant 0 : index
    %28 = vector.load %arg4[%c2, %c0_21, %c0_22] : memref<8x17x17xbf16, #tpu.memory_space<vmem>>, vector<1x17x17xbf16>
    %29 = vector.shape_cast %28 : vector<1x17x17xbf16> to vector<17x17xbf16>
    %30 = arith.truncf %27 : vector<17x128xf32> to vector<17x128xbf16>
    %cst_23 = arith.constant dense<0.000000e+00> : vector<17x128xf32>
    %31 = tpu.matmul %29, %30, %cst_23 {dimension_numbers = #tpu.dot_dimension_numbers<[1], [0], [0], [1], [0, 0, 1, 1], [], []>} : vector<17x17xbf16>, vector<17x128xbf16>, vector<17x128xf32> -> vector<17x128xf32>
    %c2_24 = arith.constant 2 : index
    %c0_25 = arith.constant 0 : index
    %c0_26 = arith.constant 0 : index
    %32 = vector.load %arg5[%c2_24, %c0_25, %c0_26] : memref<8x17x1xf32, #tpu.memory_space<vmem>>, vector<1x17x1xf32>
    %33 = vector.shape_cast %32 : vector<1x17x1xf32> to vector<17x1xf32>
    %34 = vector.broadcast %33 : vector<17x1xf32> to vector<17x128xf32>
    %35 = arith.addf %31, %34 : vector<17x128xf32>
    %cst_27 = arith.constant 0.000000e+00 : f32
    %36 = vector.broadcast %cst_27 : f32 to vector<17x128xf32>
    %37 = arith.maximumf %35, %36 : vector<17x128xf32>
    %c3 = arith.constant 3 : index
    %c0_28 = arith.constant 0 : index
    %c0_29 = arith.constant 0 : index
    %38 = vector.load %arg4[%c3, %c0_28, %c0_29] : memref<8x17x17xbf16, #tpu.memory_space<vmem>>, vector<1x17x17xbf16>
    %39 = vector.shape_cast %38 : vector<1x17x17xbf16> to vector<17x17xbf16>
    %40 = arith.truncf %37 : vector<17x128xf32> to vector<17x128xbf16>
    %cst_30 = arith.constant dense<0.000000e+00> : vector<17x128xf32>
    %41 = tpu.matmul %39, %40, %cst_30 {dimension_numbers = #tpu.dot_dimension_numbers<[1], [0], [0], [1], [0, 0, 1, 1], [], []>} : vector<17x17xbf16>, vector<17x128xbf16>, vector<17x128xf32> -> vector<17x128xf32>
    %c3_31 = arith.constant 3 : index
    %c0_32 = arith.constant 0 : index
    %c0_33 = arith.constant 0 : index
    %42 = vector.load %arg5[%c3_31, %c0_32, %c0_33] : memref<8x17x1xf32, #tpu.memory_space<vmem>>, vector<1x17x1xf32>
    %43 = vector.shape_cast %42 : vector<1x17x1xf32> to vector<17x1xf32>
    %44 = vector.broadcast %43 : vector<17x1xf32> to vector<17x128xf32>
    %45 = arith.addf %41, %44 : vector<17x128xf32>
    %cst_34 = arith.constant 0.000000e+00 : f32
    %46 = vector.broadcast %cst_34 : f32 to vector<17x128xf32>
    %47 = arith.maximumf %45, %46 : vector<17x128xf32>
    %c4 = arith.constant 4 : index
    %c0_35 = arith.constant 0 : index
    %c0_36 = arith.constant 0 : index
    %48 = vector.load %arg4[%c4, %c0_35, %c0_36] : memref<8x17x17xbf16, #tpu.memory_space<vmem>>, vector<1x17x17xbf16>
    %49 = vector.shape_cast %48 : vector<1x17x17xbf16> to vector<17x17xbf16>
    %50 = arith.truncf %47 : vector<17x128xf32> to vector<17x128xbf16>
    %cst_37 = arith.constant dense<0.000000e+00> : vector<17x128xf32>
    %51 = tpu.matmul %49, %50, %cst_37 {dimension_numbers = #tpu.dot_dimension_numbers<[1], [0], [0], [1], [0, 0, 1, 1], [], []>} : vector<17x17xbf16>, vector<17x128xbf16>, vector<17x128xf32> -> vector<17x128xf32>
    %c4_38 = arith.constant 4 : index
    %c0_39 = arith.constant 0 : index
    %c0_40 = arith.constant 0 : index
    %52 = vector.load %arg5[%c4_38, %c0_39, %c0_40] : memref<8x17x1xf32, #tpu.memory_space<vmem>>, vector<1x17x1xf32>
    %53 = vector.shape_cast %52 : vector<1x17x1xf32> to vector<17x1xf32>
    %54 = vector.broadcast %53 : vector<17x1xf32> to vector<17x128xf32>
    %55 = arith.addf %51, %54 : vector<17x128xf32>
    %cst_41 = arith.constant 0.000000e+00 : f32
    %56 = vector.broadcast %cst_41 : f32 to vector<17x128xf32>
    %57 = arith.maximumf %55, %56 : vector<17x128xf32>
    %c5 = arith.constant 5 : index
    %c0_42 = arith.constant 0 : index
    %c0_43 = arith.constant 0 : index
    %58 = vector.load %arg4[%c5, %c0_42, %c0_43] : memref<8x17x17xbf16, #tpu.memory_space<vmem>>, vector<1x17x17xbf16>
    %59 = vector.shape_cast %58 : vector<1x17x17xbf16> to vector<17x17xbf16>
    %60 = arith.truncf %57 : vector<17x128xf32> to vector<17x128xbf16>
    %cst_44 = arith.constant dense<0.000000e+00> : vector<17x128xf32>
    %61 = tpu.matmul %59, %60, %cst_44 {dimension_numbers = #tpu.dot_dimension_numbers<[1], [0], [0], [1], [0, 0, 1, 1], [], []>} : vector<17x17xbf16>, vector<17x128xbf16>, vector<17x128xf32> -> vector<17x128xf32>
    %c5_45 = arith.constant 5 : index
    %c0_46 = arith.constant 0 : index
    %c0_47 = arith.constant 0 : index
    %62 = vector.load %arg5[%c5_45, %c0_46, %c0_47] : memref<8x17x1xf32, #tpu.memory_space<vmem>>, vector<1x17x1xf32>
    %63 = vector.shape_cast %62 : vector<1x17x1xf32> to vector<17x1xf32>
    %64 = vector.broadcast %63 : vector<17x1xf32> to vector<17x128xf32>
    %65 = arith.addf %61, %64 : vector<17x128xf32>
    %cst_48 = arith.constant 0.000000e+00 : f32
    %66 = vector.broadcast %cst_48 : f32 to vector<17x128xf32>
    %67 = arith.maximumf %65, %66 : vector<17x128xf32>
    %c6 = arith.constant 6 : index
    %c0_49 = arith.constant 0 : index
    %c0_50 = arith.constant 0 : index
    %68 = vector.load %arg4[%c6, %c0_49, %c0_50] : memref<8x17x17xbf16, #tpu.memory_space<vmem>>, vector<1x17x17xbf16>
    %69 = vector.shape_cast %68 : vector<1x17x17xbf16> to vector<17x17xbf16>
    %70 = arith.truncf %67 : vector<17x128xf32> to vector<17x128xbf16>
    %cst_51 = arith.constant dense<0.000000e+00> : vector<17x128xf32>
    %71 = tpu.matmul %69, %70, %cst_51 {dimension_numbers = #tpu.dot_dimension_numbers<[1], [0], [0], [1], [0, 0, 1, 1], [], []>} : vector<17x17xbf16>, vector<17x128xbf16>, vector<17x128xf32> -> vector<17x128xf32>
    %c6_52 = arith.constant 6 : index
    %c0_53 = arith.constant 0 : index
    %c0_54 = arith.constant 0 : index
    %72 = vector.load %arg5[%c6_52, %c0_53, %c0_54] : memref<8x17x1xf32, #tpu.memory_space<vmem>>, vector<1x17x1xf32>
    %73 = vector.shape_cast %72 : vector<1x17x1xf32> to vector<17x1xf32>
    %74 = vector.broadcast %73 : vector<17x1xf32> to vector<17x128xf32>
    %75 = arith.addf %71, %74 : vector<17x128xf32>
    %cst_55 = arith.constant 0.000000e+00 : f32
    %76 = vector.broadcast %cst_55 : f32 to vector<17x128xf32>
    %77 = arith.maximumf %75, %76 : vector<17x128xf32>
    %c7 = arith.constant 7 : index
    %c0_56 = arith.constant 0 : index
    %c0_57 = arith.constant 0 : index
    %78 = vector.load %arg4[%c7, %c0_56, %c0_57] : memref<8x17x17xbf16, #tpu.memory_space<vmem>>, vector<1x17x17xbf16>
    %79 = vector.shape_cast %78 : vector<1x17x17xbf16> to vector<17x17xbf16>
    %80 = arith.truncf %77 : vector<17x128xf32> to vector<17x128xbf16>
    %cst_58 = arith.constant dense<0.000000e+00> : vector<17x128xf32>
    %81 = tpu.matmul %79, %80, %cst_58 {dimension_numbers = #tpu.dot_dimension_numbers<[1], [0], [0], [1], [0, 0, 1, 1], [], []>} : vector<17x17xbf16>, vector<17x128xbf16>, vector<17x128xf32> -> vector<17x128xf32>
    %c7_59 = arith.constant 7 : index
    %c0_60 = arith.constant 0 : index
    %c0_61 = arith.constant 0 : index
    %82 = vector.load %arg5[%c7_59, %c0_60, %c0_61] : memref<8x17x1xf32, #tpu.memory_space<vmem>>, vector<1x17x1xf32>
    %83 = vector.shape_cast %82 : vector<1x17x1xf32> to vector<17x1xf32>
    %84 = vector.broadcast %83 : vector<17x1xf32> to vector<17x128xf32>
    %85 = arith.addf %81, %84 : vector<17x128xf32>
    %cst_62 = arith.constant 0.000000e+00 : f32
    %86 = vector.broadcast %cst_62 : f32 to vector<17x128xf32>
    %87 = arith.maximumf %85, %86 : vector<17x128xf32>
    %c0_63 = arith.constant 0 : index
    %c0_64 = arith.constant 0 : index
    %88 = vector.load %arg6[%c0_63, %c0_64] : memref<17x1xf32, #tpu.memory_space<vmem>>, vector<17x1xf32>
    %89 = vector.broadcast %88 : vector<17x1xf32> to vector<17x128xf32>
    %90 = arith.mulf %87, %89 : vector<17x128xf32>
    %cst_65 = arith.constant dense<0.000000e+00> : vector<128xf32>
    %91 = vector.multi_reduction <add>, %90, %cst_65 [0] : vector<17x128xf32> to vector<128xf32>
    %92 = vector.shape_cast %91 : vector<128xf32> to vector<1x128xf32>
    %c0_66 = arith.constant 0 : index
    %c0_67 = arith.constant 0 : index
    %93 = vector.load %arg7[%c0_66, %c0_67] : memref<1x1xf32, #tpu.memory_space<vmem>>, vector<1x1xf32>
    %94 = vector.broadcast %93 : vector<1x1xf32> to vector<1x128xf32>
    %95 = arith.addf %92, %94 : vector<1x128xf32>
    %96 = arith.negf %95 : vector<1x128xf32>
    %97 = math.exp %96 : vector<1x128xf32>
    %cst_68 = arith.constant 1.000000e+00 : f32
    %98 = vector.broadcast %cst_68 : f32 to vector<1x128xf32>
    %99 = arith.addf %98, %97 : vector<1x128xf32>
    %100 = arith.divf %98, %99 : vector<1x128xf32>
    %c0_69 = arith.constant 0 : index
    %c0_70 = arith.constant 0 : index
    %101 = vector.load %arg8[%c0_69, %c0_70] : memref<1x128xf32, #tpu.memory_space<vmem>>, vector<1x128xf32>
    tpu.vector_store %arg8[%c0_69, %c0_70], %100 {strides = array<i32>} : memref<1x128xf32, #tpu.memory_space<vmem>>, vector<1x128xf32>,
    return
  }
  func.func @transform_0(%arg0: i32) -> (i32, i32) {
    %c0_i32 = arith.constant 0 : i32
    %c0_i32_0 = arith.constant 0 : i32
    return %c0_i32, %arg0 : i32, i32
  }
  func.func @transform_1(%arg0: i32) -> (i32, i32) {
    %c0_i32 = arith.constant 0 : i32
    %c0_i32_0 = arith.constant 0 : i32
    %c0_i32_1 = arith.constant 0 : i32
    return %c0_i32, %c0_i32_0 : i32, i32
  }
  func.func @transform_2(%arg0: i32) -> (i32, i32) {
    %c0_i32 = arith.constant 0 : i32
    %c0_i32_0 = arith.constant 0 : i32
    %c0_i32_1 = arith.constant 0 : i32
    return %c0_i32, %c0_i32_0 : i32, i32
  }
  func.func @transform_3(%arg0: i32) -> (i32, i32, i32) {
    %c0_i32 = arith.constant 0 : i32
    %c0_i32_0 = arith.constant 0 : i32
    %c0_i32_1 = arith.constant 0 : i32
    %c0_i32_2 = arith.constant 0 : i32
    return %c0_i32, %c0_i32_0, %c0_i32_1 : i32, i32, i32
  }
  func.func @transform_4(%arg0: i32) -> (i32, i32, i32) {
    %c0_i32 = arith.constant 0 : i32
    %c0_i32_0 = arith.constant 0 : i32
    %c0_i32_1 = arith.constant 0 : i32
    %c0_i32_2 = arith.constant 0 : i32
    return %c0_i32, %c0_i32_0, %c0_i32_1 : i32, i32, i32
  }
  func.func @transform_5(%arg0: i32) -> (i32, i32) {
    %c0_i32 = arith.constant 0 : i32
    %c0_i32_0 = arith.constant 0 : i32
    %c0_i32_1 = arith.constant 0 : i32
    return %c0_i32, %c0_i32_0 : i32, i32
  }
  func.func @transform_6(%arg0: i32) -> (i32, i32) {
    %c0_i32 = arith.constant 0 : i32
    %c0_i32_0 = arith.constant 0 : i32
    %c0_i32_1 = arith.constant 0 : i32
    return %c0_i32, %c0_i32_0 : i32, i32
  }
  func.func @transform_7(%arg0: i32) -> (i32, i32) {
    %c0_i32 = arith.constant 0 : i32
    %c0_i32_0 = arith.constant 0 : i32
    return %c0_i32, %arg0 : i32, i32
  }
}

</mosaic_0001>

<bundles_post_ra>
// kernel: tpu_custom_call.1
= control target key start
LH: loop header
LB: loop body
LE: loop exit
PB: predicated region body
PF: predicated region fallthrough
CT: control target
= control target key end

     0   :  { %s1413_s0 = inlined_call_operand.vmem [shape: bf16[26,128], index: 0, kind: input, shape index: {}]   ;;  %s1414_s1 = inlined_call_operand.vmem [shape: bf16[17,26], index: 1, kind: input, shape index: {}]   ;;  %s1415_s2 = inlined_call_operand.vmem [shape: f32[17,1], index: 2, kind: input, shape index: {}]   ;;  %s1416_s3 = inlined_call_operand.vmem [shape: bf16[8,17,17], index: 3, kind: input, shape index: {}]   ;;  %s1417_s4 = inlined_call_operand.vmem [shape: f32[8,17,1], index: 4, kind: input, shape index: {}]   ;;  %s1418_s5 = inlined_call_operand.vmem [shape: f32[17,1], index: 5, kind: input, shape index: {}]   ;;  %s1419_s6 = inlined_call_operand.<no memory space> [shape: f32[1,1], index: 6, kind: input, shape index: {}]   ;;  %s1420_s7 = inlined_call_operand.hbm [shape: f32[1,128], index: 7, kind: output, shape index: {}]  }
   0x1   :  { %v12_v0 = vstv %s1419_s6 }
   0x2   :  { %13 = vst [vmem:[#allocation2] sm:$0x1] %v12_v0 }
   0x3   :  { %v1138_v1 = vld [vmem:[%s1413_s0 + $0x8] sm:$0x1f]   ;;  %vm81_vm0 = vcmask 1044480   ;;  %v1139_v2 = vld [vmem:[%s1413_s0] sm:$0xff]   ;;  %vm74_vm1 = vcmask 211968   ;;  %v1184_v6 = vmov 0  }
   0x4   :  { %1133 = vmatprep.subr.msk.bf16.mxu0 %vm81_vm0, %v1138_v1  ;;  %v83_v3 = vsel %vm81_vm0, %v1138_v1, 0  ;;  %v1140_v4 = vld [vmem:[%s1414_s1] sm:$0xff]   ;;  %v39_v5 = vld [vmem:[%s1415_s2 + $0x10] sm:$0x1]  ;;  %1136 = vset.pattern.permute.xlu0 %v1184_v6  ;;  %v38_v7 = vld [vmem:[%s1415_s2 + $0x8] sm:$0xff] }
   0x5   :  { %1062 = vmatpush3.bf16.msra.mxu0 %v83_v3  ;;  %1065 = vmatprep.mubr.msk.bf16.mxu0 %vm74_vm1, %v1140_v4  ;;  %v1141_v8 = vld [vmem:[%s1414_s1 + $0x8] ss:$0 sps:$4 sm:$0x11]   ;;  %v37_v9 = vld [vmem:[%s1415_s2] sm:$0xff]  ;;  %v143_v10 = vld [vmem:[%s1417_s4 + $0x10] sm:$0x1] }
   0x6   :  { %1063 = vmatprep.subr.bf16.mxu0 %v1139_v2  ;;  %1137 = vset.pattern.permute.xlu1 %v1184_v6  ;;  %v141_v11 = vld [vmem:[%s1417_s4] sm:$0xff]  ;;  %v142_v12 = vld [vmem:[%s1417_s4 + $0x8] sm:$0xff]  ;;  %v957_v14 = vld [vmem:[%s1417_s4 + $0x18] sm:$0xff] }
   0x7   :  { %52 = vperm.xlu0 %1136, %v39_v5   ;;  %47 = vperm.xlu1 %1137, %v38_v7   ;;  %v959_v13 = vld [vmem:[%s1417_s4 + $0x28] sm:$0x1]  ;;  %v958_v15 = vld [vmem:[%s1417_s4 + $0x20] sm:$0xff] }
   0x8   :  { %v969_v16 = vld [vmem:[%s1417_s4 + $0x40] sm:$0x1] }
   0x9   :  { %1064 = vmatpush3.bf16.msra.mxu0 %v1139_v2 }
   0xb   :  { %42 = vperm.xlu0 %1136, %v37_v9   ;;  %156 = vperm.xlu1 %1137, %v143_v10  }
   0xc   :  { %1066 = vmatmul.mubr.msk.bf16.vlgmr.msra.gmra.mxu0 %vm74_vm1, %v1141_v8 }
   0xf   :  { %146 = vperm.xlu0 %1136, %v141_v11   ;;  %151 = vperm.xlu1 %1137, %v142_v12  }
  0x13   :  { %253 = vperm.xlu0 %1136, %v959_v13   ;;  %243 = vperm.xlu1 %1137, %v957_v14  }
  0x17   :  { %248 = vperm.xlu0 %1136, %v958_v15  }
  0x18   :  { %14 = vsyncpa [#allocation4], 0  ;;  %v967_v17 = vld [vmem:[%s1417_s4 + $0x30] sm:$0xff]  ;;  %346 = vperm.xlu1 %1137, %v969_v16   ;;  %v968_v18 = vld [vmem:[%s1417_s4 + $0x38] sm:$0xff]  ;;  %vm167_vm2 = vcmask 138240   ;;  %vm174_vm3 = vcmask 1040384  }
  0x19   :  { %v979_v19 = vld [vmem:[%s1417_s4 + $0x58] sm:$0x1]  ;;  %v977_v20 = vld [vmem:[%s1417_s4 + $0x48] sm:$0xff]  ;;  %v978_v21 = vld [vmem:[%s1417_s4 + $0x50] sm:$0xff]  ;;  %v1339_v44 = vsel %vm174_vm3, 65535, %v1184_v6 }
  0x1a   :  { %v989_v22 = vld [vmem:[%s1417_s4 + $0x70] sm:$0x1]  ;;  %v987_v23 = vld [vmem:[%s1417_s4 + $0x60] sm:$0xff]  ;;  %v988_v24 = vld [vmem:[%s1417_s4 + $0x68] sm:$0xff] }
  0x1b   :  { %336 = vperm.xlu0 %1136, %v967_v17   ;;  %v999_v25 = vld [vmem:[%s1417_s4 + $0x88] sm:$0x1]  ;;  %v997_v26 = vld [vmem:[%s1417_s4 + $0x78] sm:$0xff]  ;;  %v998_v27 = vld [vmem:[%s1417_s4 + $0x80] sm:$0xff] }
  0x1c   :  { %341 = vperm.xlu1 %1137, %v968_v18   ;;  %v1009_v28 = vld [vmem:[%s1417_s4 + $0xa0] sm:$0x1]  ;;  %v1007_v29 = vld [vmem:[%s1417_s4 + $0x90] sm:$0xff]  ;;  %v1008_v30 = vld [vmem:[%s1417_s4 + $0x98] sm:$0xff] }
  0x1d   :  { %v1017_v31 = vld [vmem:[%s1417_s4 + $0xa8] sm:$0xff]  ;;  %v1018_v32 = vld [vmem:[%s1417_s4 + $0xb0] sm:$0xff]  ;;  %v1019_v33 = vld [vmem:[%s1417_s4 + $0xb8] sm:$0x1] }
  0x1e   :  { %v882_v34 = vld [vmem:[%s1418_s5] sm:$0xff]  ;;  %v883_v35 = vld [vmem:[%s1418_s5 + $0x8] sm:$0xff]  ;;  %v884_v36 = vld [vmem:[%s1418_s5 + $0x10] sm:$0x1] }
  0x1f   :  { %439 = vperm.xlu0 %1136, %v979_v19   ;;  %v912_v37 = vld [vmem:[#allocation2] sm:$0x1]  ;;  %v1143_v56 = vld [vmem:[%s1416_s3 + $0x8] ss:$0 sps:$4 sm:$0x11]   ;;  %v1144_v57 = vld [vmem:[%s1416_s3 + $0xc] sm:$0xff]  }
  0x20   :  { %429 = vperm.xlu1 %1137, %v977_v20   ;;  %v1142_v38 = vld [vmem:[%s1416_s3] sm:$0xff]   ;;  %1081 = vmatprep.mubr.msk.bf16.mxu0 %vm167_vm2, %v1144_v57  ;;  %v1145_v10 = vld [vmem:[%s1416_s3 + $0x14] ss:$0 sps:$4 sm:$0x11]   ;;  %v1146_v11 = vld [vmem:[%s1416_s3 + $0x18] sm:$0xff]  }
  0x21   :  { %1073 = vmatprep.mubr.msk.bf16.mxu1 %vm167_vm2, %v1142_v38 }
  0x23   :  { %434 = vperm.xlu0 %1136, %v978_v21  }
  0x24   :  { %532 = vperm.xlu1 %1137, %v989_v22  }
  0x27   :  { %522 = vperm.xlu0 %1136, %v987_v23  }
  0x28   :  { %527 = vperm.xlu1 %1137, %v988_v24  }
  0x2b   :  { %625 = vperm.xlu0 %1136, %v999_v25  }
  0x2c   :  { %615 = vperm.xlu1 %1137, %v997_v26  }
  0x2f   :  { %620 = vperm.xlu0 %1136, %v998_v27  }
  0x30   :  { %718 = vperm.xlu1 %1137, %v1009_v28   ;;  %v1147_v28 = vld [vmem:[%s1416_s3 + $0x20] ss:$0 sps:$4 sm:$0x11]  }
  0x33   :  { %708 = vperm.xlu0 %1136, %v1007_v29   ;;  %v1148_v29 = vld [vmem:[%s1416_s3 + $0x24] sm:$0xff]  }
  0x34   :  { %713 = vperm.xlu1 %1137, %v1008_v30  }
  0x37   :  { %801 = vperm.xlu0 %1136, %v1017_v31  }
  0x38   :  { %806 = vperm.xlu1 %1137, %v1018_v32  }
  0x3b   :  { %811 = vperm.xlu0 %1136, %v1019_v33  }
  0x3c   :  { %887 = vperm.xlu1 %1137, %v882_v34  }
  0x3f   :  { %892 = vperm.xlu0 %1136, %v883_v35  }
  0x40   :  { %897 = vperm.xlu1 %1137, %v884_v36  }
  0x43   :  { %915 = vperm.xlu0 %1136, %v912_v37  }
  0x82   :  { %v53_v39 = vpop.permute.xlu0 %52  ;;  %v48_v49 = vpop.permute.xlu1 %47 }
  0x86   :  { %v43_v45 = vpop.permute.xlu0 %42  ;;  %v157_v58 = vpop.permute.xlu1 %156 }
  0x8a   :  { %v147_v63 = vpop.permute.xlu0 %146  ;;  %v152_v3 = vpop.permute.xlu1 %151 }
  0x8e   :  { %v254_v12 = vpop.permute.xlu0 %253  ;;  %v244_v17 = vpop.permute.xlu1 %243 }
  0x92   :  { %v249_v21 = vpop.permute.xlu0 %248 }
  0x93   :  { %v347_v30 = vpop.permute.xlu1 %346 }
  0x96   :  { %v337_v35 = vpop.permute.xlu0 %336 }
  0xcc   :  { %v1067_v40 = vpop.f32.mrf.mxu0 }
  0xcd   :  { %v128_v41 = vadd.f32 %v1067_v40, %v53_v39  ;;  %v342_v39 = vpop.permute.xlu1 %341 }
  0xce   :  { %v119_v42 = vpop.f32.mrf.mxu0 }
  0xcf   :  { %v135_v43 = vmax.f32 %v128_v41, 0.0  ;;  %v120_v48 = vadd.f32 %v119_v42, %v43_v45 }
  0xd0   :  { %v1068_v46 = vpop.f32.mrf.mxu0 }
  0xd1   :  { %v140_v47 = vpack.c.bf16 %v135_v43, %v135_v43  ;;  %v133_v53 = vmax.f32 %v120_v48, 0.0  ;;  %v1150_v48 = vld [vmem:[%s1416_s3 + $0x30] sm:$0xff]  }
  0xd2   :  { %v122_v50 = vpop.f32.mrf.mxu0 }
  0xd3   :  { %v123_v51 = vadd.f32 %v122_v50, %v48_v49  ;;  %v178_v52 = vand.u32 %v1339_v44, %v140_v47  ;;  %v1149_v47 = vld [vmem:[%s1416_s3 + $0x2c] ss:$0 sps:$4 sm:$0x11]   ;;  %v440_v49 = vpop.permute.xlu0 %439 }
  0xd5   :  { %v134_v54 = vmax.f32 %v123_v51, 0.0  ;;  %1069 = vmatprep.subr.bf16.mxu1 %v178_v52 }
  0xd6   :  { %1070 = vmatpush3.bf16.msra.mxu1 %v178_v52 }
  0xd7   :  { %v139_v55 = vpack.c.bf16 %v134_v54, %v133_v53  ;;  %v430_v54 = vpop.permute.xlu1 %429 }
  0xd9   :  { %1071 = vmatprep.subr.bf16.mxu1 %v139_v55 }
  0xda   :  { %1072 = vmatpush3.bf16.msra.mxu1 %v139_v55 }
  0xdd   :  { %1074 = vmatmul.mubr.msk.bf16.vlgmr.msra.gmra.mxu1 %vm167_vm2, %v1143_v56 }
  0xde   :  { %1089 = vmatprep.mubr.msk.bf16.mxu1 %vm167_vm2, %v1146_v11 }
 0x19d   :  { %v1075_v59 = vpop.f32.mrf.mxu1 }
 0x19e   :  { %v223_v60 = vadd.f32 %v1075_v59, %v157_v58  ;;  %v435_v58 = vpop.permute.xlu0 %434 }
 0x19f   :  { %v214_v61 = vpop.f32.mrf.mxu1 }
 0x1a0   :  { %v230_v62 = vmax.f32 %v223_v60, 0.0  ;;  %v215_v2 = vadd.f32 %v214_v61, %v147_v63 }
 0x1a1   :  { %v1076_v0 = vpop.f32.mrf.mxu1 }
 0x1a2   :  { %v236_v1 = vpack.c.bf16 %v230_v62, %v230_v62  ;;  %v228_v7 = vmax.f32 %v215_v2, 0.0  ;;  %v1152_v2 = vld [vmem:[%s1416_s3 + $0x3c] sm:$0xff]  }
 0x1a3   :  { %v217_v4 = vpop.f32.mrf.mxu1 }
 0x1a4   :  { %v271_v5 = vand.u32 %v236_v1, %v1339_v44  ;;  %v218_v6 = vadd.f32 %v217_v4, %v152_v3  ;;  %v1151_v1 = vld [vmem:[%s1416_s3 + $0x38] ss:$0 sps:$4 sm:$0x11]   ;;  %v533_v3 = vpop.permute.xlu1 %532 }
 0x1a6   :  { %v229_v8 = vmax.f32 %v218_v6, 0.0  ;;  %1077 = vmatprep.subr.bf16.mxu0 %v271_v5 }
 0x1a7   :  { %1078 = vmatpush3.bf16.msra.mxu0 %v271_v5 }
 0x1a8   :  { %v235_v9 = vpack.c.bf16 %v229_v8, %v228_v7  ;;  %v523_v8 = vpop.permute.xlu0 %522 }
 0x1aa   :  { %1079 = vmatprep.subr.bf16.mxu0 %v235_v9 }
 0x1ab   :  { %1080 = vmatpush3.bf16.msra.mxu0 %v235_v9 }
 0x1ae   :  { %1082 = vmatmul.mubr.msk.bf16.vlgmr.msra.gmra.mxu0 %vm167_vm2, %v1145_v10 }
 0x1af   :  { %1097 = vmatprep.mubr.msk.bf16.mxu0 %vm167_vm2, %v1148_v29 }
 0x26e   :  { %v1083_v13 = vpop.f32.mrf.mxu0 }
 0x26f   :  { %v316_v14 = vadd.f32 %v1083_v13, %v254_v12  ;;  %v528_v12 = vpop.permute.xlu1 %527 }
 0x270   :  { %v307_v15 = vpop.f32.mrf.mxu0 }
 0x271   :  { %v323_v16 = vmax.f32 %v316_v14, 0.0  ;;  %v308_v20 = vadd.f32 %v307_v15, %v244_v17 }
 0x272   :  { %v1084_v18 = vpop.f32.mrf.mxu0 }
 0x273   :  { %v329_v19 = vpack.c.bf16 %v323_v16, %v323_v16  ;;  %v321_v25 = vmax.f32 %v308_v20, 0.0  ;;  %v1154_v20 = vld [vmem:[%s1416_s3 + $0x48] sm:$0xff]  }
 0x274   :  { %v310_v22 = vpop.f32.mrf.mxu0 }
 0x275   :  { %v364_v23 = vand.u32 %v329_v19, %v1339_v44  ;;  %v311_v24 = vadd.f32 %v310_v22, %v249_v21  ;;  %v1153_v19 = vld [vmem:[%s1416_s3 + $0x44] ss:$0 sps:$4 sm:$0x11]   ;;  %v626_v21 = vpop.permute.xlu0 %625 }
 0x277   :  { %v322_v26 = vmax.f32 %v311_v24, 0.0  ;;  %1085 = vmatprep.subr.bf16.mxu1 %v364_v23 }
 0x278   :  { %1086 = vmatpush3.bf16.msra.mxu1 %v364_v23 }
 0x279   :  { %v328_v27 = vpack.c.bf16 %v322_v26, %v321_v25  ;;  %v616_v26 = vpop.permute.xlu1 %615 }
 0x27b   :  { %1087 = vmatprep.subr.bf16.mxu1 %v328_v27 }
 0x27c   :  { %1088 = vmatpush3.bf16.msra.mxu1 %v328_v27 }
 0x27f   :  { %1090 = vmatmul.mubr.msk.bf16.vlgmr.msra.gmra.mxu1 %vm167_vm2, %v1147_v28 }
 0x280   :  { %1105 = vmatprep.mubr.msk.bf16.mxu1 %vm167_vm2, %v1150_v48 }
 0x33f   :  { %v1091_v31 = vpop.f32.mrf.mxu1 }
 0x340   :  { %v409_v32 = vadd.f32 %v1091_v31, %v347_v30  ;;  %v621_v30 = vpop.permute.xlu0 %620 }
 0x341   :  { %v400_v33 = vpop.f32.mrf.mxu1 }
 0x342   :  { %v416_v34 = vmax.f32 %v409_v32, 0.0  ;;  %v401_v38 = vadd.f32 %v400_v33, %v337_v35 }
 0x343   :  { %v1092_v36 = vpop.f32.mrf.mxu1 }
 0x344   :  { %v422_v37 = vpack.c.bf16 %v416_v34, %v416_v34  ;;  %v414_v43 = vmax.f32 %v401_v38, 0.0  ;;  %v1156_v38 = vld [vmem:[%s1416_s3 + $0x54] sm:$0xff]  }
 0x345   :  { %v403_v40 = vpop.f32.mrf.mxu1 }
 0x346   :  { %v457_v41 = vand.u32 %v422_v37, %v1339_v44  ;;  %v404_v42 = vadd.f32 %v403_v40, %v342_v39  ;;  %v1155_v37 = vld [vmem:[%s1416_s3 + $0x50] ss:$0 sps:$4 sm:$0x11]   ;;  %v719_v39 = vpop.permute.xlu1 %718 }
 0x348   :  { %v415_v45 = vmax.f32 %v404_v42, 0.0  ;;  %1093 = vmatprep.subr.bf16.mxu0 %v457_v41 }
 0x349   :  { %1094 = vmatpush3.bf16.msra.mxu0 %v457_v41 }
 0x34a   :  { %v421_v46 = vpack.c.bf16 %v415_v45, %v414_v43  ;;  %v709_v45 = vpop.permute.xlu0 %708 }
 0x34c   :  { %1095 = vmatprep.subr.bf16.mxu0 %v421_v46 }
 0x34d   :  { %1096 = vmatpush3.bf16.msra.mxu0 %v421_v46 }
 0x350   :  { %1098 = vmatmul.mubr.msk.bf16.vlgmr.msra.gmra.mxu0 %vm167_vm2, %v1149_v47 }
 0x351   :  { %1113 = vmatprep.mubr.msk.bf16.mxu0 %vm167_vm2, %v1152_v2 }
 0x410   :  { %v1099_v50 = vpop.f32.mrf.mxu0 }
 0x411   :  { %v502_v51 = vadd.f32 %v1099_v50, %v440_v49  ;;  %v714_v49 = vpop.permute.xlu1 %713 }
 0x412   :  { %v493_v52 = vpop.f32.mrf.mxu0 }
 0x413   :  { %v509_v53 = vmax.f32 %v502_v51, 0.0  ;;  %v494_v57 = vadd.f32 %v493_v52, %v430_v54 }
 0x414   :  { %v1100_v55 = vpop.f32.mrf.mxu0 }
 0x415   :  { %v515_v56 = vpack.c.bf16 %v509_v53, %v509_v53  ;;  %v507_v62 = vmax.f32 %v494_v57, 0.0  ;;  %v802_v57 = vpop.permute.xlu0 %801 }
 0x416   :  { %v496_v59 = vpop.f32.mrf.mxu0 }
 0x417   :  { %v550_v60 = vand.u32 %v515_v56, %v1339_v44  ;;  %v497_v61 = vadd.f32 %v496_v59, %v435_v58  ;;  %v1157_v56 = vld [vmem:[%s1416_s3 + $0x5c] ss:$0 sps:$4 sm:$0x11]   ;;  %v807_v58 = vpop.permute.xlu1 %806  ;;  %s1185_s3 = smov [#allocation3]  }
 0x418   :  { %s936_s16 = sshll.u32 %s1185_s3, 4  ;;  %s937_s16 = int_to_ptr.vmem [resolvable:$true] %s936_s16 }
 0x419   :  { %v508_v63 = vmax.f32 %v497_v61, 0.0  ;;  %1101 = vmatprep.subr.bf16.mxu1 %v550_v60  ;;  %s1162_s17 = scalar_lea.vmem %s937_s16, 16  ;;  %s1166_s18 = scalar_lea.vmem %s937_s16, 32 }
 0x41a   :  { %1102 = vmatpush3.bf16.msra.mxu1 %v550_v60  ;;  %v812_v60 = vpop.permute.xlu0 %811  ;;  %p1163_p0 = scmp.ne.s32.totalorder %s937_s16, %s1162_s17  ;;  %p1167_p1 = scmp.lt.s32.totalorder %s937_s16, %s937_s16 }
 0x41b   :  { %v514_v0 = vpack.c.bf16 %v508_v63, %v507_v62  ;;  %v888_v62 = vpop.permute.xlu1 %887  ;;  %p1168_p2 = scmp.lt.s32.totalorder %s1166_s18, %s1162_s17 }
 0x41d   :  { %1103 = vmatprep.subr.bf16.mxu1 %v514_v0  ;;  %p1169_p3 = por %p1168_p2, %p1167_p1 }
 0x41e   :  { %1104 = vmatpush3.bf16.msra.mxu1 %v514_v0 }
 0x41f   :  { %p1170_p4 = pnand %p1169_p3, %p1163_p0 }
 0x421   :  { %1106 = vmatmul.mubr.msk.bf16.vlgmr.msra.gmra.mxu1 %vm167_vm2, %v1151_v1 }
 0x422   :  { %1121 = vmatprep.mubr.msk.bf16.mxu1 %vm167_vm2, %v1154_v20 }
 0x4e1   :  { %v1107_v4 = vpop.f32.mrf.mxu1 }
 0x4e2   :  { %v595_v5 = vadd.f32 %v1107_v4, %v533_v3 }
 0x4e3   :  { %v586_v6 = vpop.f32.mrf.mxu1 }
 0x4e4   :  { %v602_v7 = vmax.f32 %v595_v5, 0.0  ;;  %v587_v11 = vadd.f32 %v586_v6, %v523_v8  ;;  %v898_v5 = vpop.permute.xlu1 %897 }
 0x4e5   :  { %v1108_v9 = vpop.f32.mrf.mxu1 }
 0x4e6   :  { %v608_v10 = vpack.c.bf16 %v602_v7, %v602_v7  ;;  %v600_v16 = vmax.f32 %v587_v11, 0.0  ;;  %v893_v7 = vpop.permute.xlu0 %892 }
 0x4e7   :  { %v589_v13 = vpop.f32.mrf.mxu1 }
 0x4e8   :  { %v643_v14 = vand.u32 %v608_v10, %v1339_v44  ;;  %v590_v15 = vadd.f32 %v589_v13, %v528_v12  ;;  %v918_v13 = vlaneseq }
 0x4ea   :  { %v601_v17 = vmax.f32 %v590_v15, 0.0  ;;  %1109 = vmatprep.subr.bf16.mxu0 %v643_v14 }
 0x4eb   :  { %1110 = vmatpush3.bf16.msra.mxu0 %v643_v14 }
 0x4ec   :  { %v607_v18 = vpack.c.bf16 %v601_v17, %v600_v16  ;;  %v919_v16 = vshrl.u32 %v918_v13, 7 }
 0x4ee   :  { %1111 = vmatprep.subr.bf16.mxu0 %v607_v18 }
 0x4ef   :  { %1112 = vmatpush3.bf16.msra.mxu0 %v607_v18 }
 0x4f2   :  { %1114 = vmatmul.mubr.msk.bf16.vlgmr.msra.gmra.mxu0 %vm167_vm2, %v1153_v19  ;;  %v920_v19 = vsub.s32 0, %v919_v16 }
 0x4f3   :  { %1129 = vmatprep.mubr.msk.bf16.mxu0 %vm167_vm2, %v1156_v38 }
 0x5b2   :  { %v1115_v22 = vpop.f32.mrf.mxu0 }
 0x5b3   :  { %v688_v23 = vadd.f32 %v1115_v22, %v626_v21  ;;  %v916_v21 = vpop.permute.xlu0 %915 }
 0x5b4   :  { %v679_v24 = vpop.f32.mrf.mxu0 }
 0x5b5   :  { %v695_v25 = vmax.f32 %v688_v23, 0.0  ;;  %v680_v29 = vadd.f32 %v679_v24, %v616_v26  ;;  %v921_v23 = vrot.slane %v916_v21, %v920_v19 }
 0x5b6   :  { %v1116_v27 = vpop.f32.mrf.mxu0 }
 0x5b7   :  { %v701_v28 = vpack.c.bf16 %v695_v25, %v695_v25  ;;  %v693_v34 = vmax.f32 %v680_v29, 0.0 }
 0x5b8   :  { %v682_v31 = vpop.f32.mrf.mxu0 }
 0x5b9   :  { %v736_v32 = vand.u32 %v701_v28, %v1339_v44  ;;  %v683_v33 = vadd.f32 %v682_v31, %v621_v30 }
 0x5bb   :  { %v694_v35 = vmax.f32 %v683_v33, 0.0  ;;  %1117 = vmatprep.subr.bf16.mxu1 %v736_v32 }
 0x5bc   :  { %1118 = vmatpush3.bf16.msra.mxu1 %v736_v32 }
 0x5bd   :  { %v700_v36 = vpack.c.bf16 %v694_v35, %v693_v34 }
 0x5bf   :  { %1119 = vmatprep.subr.bf16.mxu1 %v700_v36 }
 0x5c0   :  { %1120 = vmatpush3.bf16.msra.mxu1 %v700_v36 }
 0x5c3   :  { %1122 = vmatmul.mubr.msk.bf16.vlgmr.msra.gmra.mxu1 %vm167_vm2, %v1155_v37 }
 0x683   :  { %v1123_v40 = vpop.f32.mrf.mxu1 }
 0x684   :  { %v781_v41 = vadd.f32 %v1123_v40, %v719_v39 }
 0x685   :  { %v772_v42 = vpop.f32.mrf.mxu1 }
 0x686   :  { %v788_v43 = vmax.f32 %v781_v41, 0.0  ;;  %v773_v48 = vadd.f32 %v772_v42, %v709_v45 }
 0x687   :  { %v1124_v46 = vpop.f32.mrf.mxu1 }
 0x688   :  { %v794_v47 = vpack.c.bf16 %v788_v43, %v788_v43  ;;  %v786_v53 = vmax.f32 %v773_v48, 0.0 }
 0x689   :  { %v775_v50 = vpop.f32.mrf.mxu1 }
 0x68a   :  { %v829_v51 = vand.u32 %v794_v47, %v1339_v44  ;;  %v776_v52 = vadd.f32 %v775_v50, %v714_v49 }
 0x68c   :  { %v787_v54 = vmax.f32 %v776_v52, 0.0  ;;  %1125 = vmatprep.subr.bf16.mxu0 %v829_v51 }
 0x68d   :  { %1126 = vmatpush3.bf16.msra.mxu0 %v829_v51 }
 0x68e   :  { %v793_v55 = vpack.c.bf16 %v787_v54, %v786_v53 }
 0x690   :  { %1127 = vmatprep.subr.bf16.mxu0 %v793_v55 }
 0x691   :  { %1128 = vmatpush3.bf16.msra.mxu0 %v793_v55 }
 0x694   :  { %1130 = vmatmul.mubr.msk.bf16.vlgmr.msra.gmra.mxu0 %vm167_vm2, %v1157_v56 }
 0x754   :  { %v1131_v59 = vpop.f32.mrf.mxu0 }
 0x755   :  { %v874_v61 = vadd.f32 %v1131_v59, %v812_v60 }
 0x756   :  { %v865_v44 = vpop.f32.mrf.mxu0 }
 0x757   :  { %v866_v63 = vadd.f32 %v865_v44, %v802_v57  ;;  %v881_v1 = vmax.f32 %v874_v61, 0.0 }
 0x758   :  { %v1132_v0 = vpop.f32.mrf.mxu0 }
 0x759   :  { %v879_v3 = vmax.f32 %v866_v63, 0.0  ;;  %v902_v8 = vmul.f32 %v898_v5, %v881_v1 }
 0x75a   :  { %v868_v2 = vpop.f32.mrf.mxu0 }
 0x75b   :  { %v869_v4 = vadd.f32 %v868_v2, %v807_v58  ;;  %v900_v9 = vmul.f32 %v888_v62, %v879_v3  ;;  %v904_v12 = vsel %vm174_vm3, %v902_v8, 0.0 }
 0x75d   :  { %v880_v6 = vmax.f32 %v869_v4, 0.0 }
 0x75f   :  { %v901_v10 = vmul.f32 %v893_v7, %v880_v6 }
 0x761   :  { %v903_v11 = vadd.f32 %v901_v10, %v900_v9 }
 0x763   :  { %v905_v14 = vadd.f32 %v904_v12, %v903_v11 }
 0x765   :  { %v906_v15 = vrot.slane %v905_v14, 4 }
 0x767   :  { %v907_v17 = vadd.f32 %v906_v15, %v905_v14 }
 0x769   :  { %v908_v18 = vrot.slane %v907_v17, 2 }
 0x76b   :  { %v909_v20 = vadd.f32 %v908_v18, %v907_v17 }
 0x76d   :  { %v910_v22 = vrot.slane %v909_v20, 1 }
 0x76f   :  { %v911_v24 = vadd.f32 %v910_v22, %v909_v20 }
 0x771   :  { %v922_v25 = vadd.f32 %v921_v23, %v911_v24 }
 0x773   :  { %v1024_v26 = vmul.f32 -1.442695, %v922_v25 }
 0x775   :  { %1158 = vpow2.f32 %v1024_v26 }
 0x782   :  { %v1159_v27 = vpop.eup %1158 }
 0x783   :  { %v926_v28 = vadd.f32 1.0, %v1159_v27 }
 0x785   :  { %1160 = vrcp.f32 %v926_v28 }
 0x792   :  { %v1161_v29 = vpop.eup %1160 }
 0x793   :  { %929 = vst [vmem:[#allocation3] sm:$0x1] %v1161_v29 }
 0x794   :  { %1173 = shalt.err (!%p1170_p4)
}
 0x795   :  { %939 = dma.vmem_to_hbm [thread:$0]  %s937_s16, 16, %s1420_s7, [#allocation4]  }
 0x796   :  { %1182 = dma.done.wait [#allocation4], 16  }
 0x797   :  { %1183 = vsyncadd [#allocation4], 4294967280 }
 0x798   :  { %943 = vsyncpa [#allocation4], 1 }

</bundles_post_ra>
